<compile_context>
chip_gen: v5e
topology: v5e:2x2
jax: 0.10.0
libtpu: 0.0.40
codegen_flags: <defaults>
</compile_context>

<pallas_src>
import functools

import jax
import jax.numpy as jnp
from jax.experimental import pallas as pl
from jax.experimental.pallas import tpu as pltpu

INPUT_SIZE = 8
HIDDEN_SIZE = 256
OUTPUT_SIZE = 1
LANE = 128        # lane width: batch tile must be a multiple of this
MAX_TB = 4096     # (256, 4096) f32 intermediate ~4 MiB; well inside the 16/32 MiB
                  # scoped-VMEM defaults on v5e/v6e/v7x (we also raise vmem_limit_bytes)


def _round_up(x, m):
    return -(-x // m) * m


def value_nn_kernel(xT_ref, w1a_ref, w2T_ref, b2_ref, o_ref):
    """One batch tile (batch on lanes):
       o(1,TB) = W2^T(1,256) @ relu(W1aug^T(256,9) @ [x;1]^T(9,TB)) + b2(1,1)."""
    # bf16 (256,9) @ bf16 (9,TB) -> f32 (256,TB): single-pass MXU matmul, bias folded in.
    h = jnp.dot(w1a_ref[...], xT_ref[...], preferred_element_type=jnp.float32)
    h = jnp.maximum(h, 0.0).astype(jnp.bfloat16)            # ReLU + cast for bf16 layer 2
    # bf16 (1,256) @ bf16 (256,TB) -> f32 (1,TB): lane-dense projection on the MXU.
    y = jnp.dot(w2T_ref[...], h, preferred_element_type=jnp.float32)
    o_ref[...] = (y + b2_ref[...]).astype(o_ref.dtype)      # lane-dense store


@functools.partial(jax.jit, static_argnames=("max_tb",))
def value_nn_forward(x, w1, b1, w2, b2, *, max_tb=MAX_TB):
    """Batched ValueNN forward. x: [B, 8] float32 -> [B, 1] float32.

    Storage convention (torch Linear with W stored transposed):
      w1: (8, 256), b1: (256,), w2: (256, 1), b2: (1,)
      y = relu(x @ w1 + b1) @ w2 + b2
    """
    B, F = x.shape
    assert F == INPUT_SIZE
    assert max_tb % LANE == 0 and max_tb >= LANE, "max_tb must be a multiple of 128"

    # Lane-aligned padded batch and batch tile. If the whole batch would fit one tile
    # but is >= 256, split it in two so the "parallel" grid axis can shard across
    # v7x's two TensorCores (one grid step would leave a TC idle).
    b_pad = _round_up(max(B, LANE), LANE)
    tb = min(max_tb, b_pad)
    if tb == b_pad and b_pad >= 2 * LANE:
        tb = _round_up(b_pad // 2, LANE)
    b_pad = _round_up(b_pad, tb)

    # Kernel input: bf16 (9, b_pad) = [x^T ; ones] padded on the lane axis. The cast,
    # transpose, ones-row concat and pad fuse into a single small XLA copy (x is the
    # only streamed operand and is now read/written once, at half the f32 width).
    # TODO(synk): produce x already as bf16 (9, B) upstream to drop this copy entirely.
    x_bf = x.astype(jnp.bfloat16)
    xT = jnp.concatenate([x_bf.T, jnp.ones((1, B), jnp.bfloat16)], axis=0)   # (9, B)
    xT = jnp.pad(xT, ((0, 0), (0, b_pad - B)))                               # (9, b_pad)

    # W1^T with b1 folded in as the 9th column; bf16 inputs, f32 accumulation on MXU.
    w1a = jnp.concatenate(
        [jnp.transpose(w1), b1.reshape(HIDDEN_SIZE, 1)], axis=1
    ).astype(jnp.bfloat16)                                   # (256, 9)
    w2T = jnp.transpose(w2).astype(jnp.bfloat16)             # (1, 256)
    b2c = b2.reshape(1, 1).astype(jnp.float32)               # (1, 1) added in f32

    out = pl.pallas_call(
        value_nn_kernel,
        out_shape=jax.ShapeDtypeStruct((1, b_pad), jnp.float32),
        grid_spec=pl.GridSpec(
            grid=(b_pad // tb,),
            in_specs=[
                pl.BlockSpec((INPUT_SIZE + 1, tb), lambda i: (0, i)),            # [x;1]^T tile
                pl.BlockSpec((HIDDEN_SIZE, INPUT_SIZE + 1), lambda i: (0, 0)),   # W1aug^T (resident)
                pl.BlockSpec((1, HIDDEN_SIZE), lambda i: (0, 0)),                # W2^T    (resident)
                pl.BlockSpec((1, 1), lambda i: (0, 0)),                          # b2      (resident)
            ],
            out_specs=pl.BlockSpec((1, tb), lambda i: (0, i)),                   # lane-dense output
        ),
        compiler_params=pltpu.CompilerParams(
            dimension_semantics=("parallel",),   # batch axis shards across v7x's 2 TCs
            vmem_limit_bytes=32 * 1024 * 1024,   # headroom for the (256, TB) f32 intermediate
        ),
    )(xT, w1a, w2T, b2c)

    # Padded columns carry relu(b1)-derived garbage; the slice below discards them.
    return out[0, :B].reshape(B, OUTPUT_SIZE)


def value_nn_forward_scalar(state, params):
    """Mirror of ValueNN.forward(x) -> float (single state, .item()).

    A 1x8 input is 100% kernel-launch overhead, so the single-state path uses the
    plain JAX expression instead of the Pallas kernel (same math, same weights)."""
    w1, b1, w2, b2 = params
    out = reference_forward(state.reshape(1, INPUT_SIZE).astype(jnp.float32), w1, b1, w2, b2)
    return float(out[0, 0])


def init_params(key):
    """Deterministic init mimicking torch.nn.Linear default (U[-1/sqrt(fan_in), +1/sqrt(fan_in)])."""
    k1, k2, k3, k4 = jax.random.split(key, 4)
    bound1 = 1.0 / jnp.sqrt(INPUT_SIZE)
    bound2 = 1.0 / jnp.sqrt(HIDDEN_SIZE)
    w1 = jax.random.uniform(k1, (INPUT_SIZE, HIDDEN_SIZE), jnp.float32, -bound1, bound1)
    b1 = jax.random.uniform(k2, (HIDDEN_SIZE,), jnp.float32, -bound1, bound1)
    w2 = jax.random.uniform(k3, (HIDDEN_SIZE, OUTPUT_SIZE), jnp.float32, -bound2, bound2)
    b2 = jax.random.uniform(k4, (OUTPUT_SIZE,), jnp.float32, -bound2, bound2)
    return w1, b1, w2, b2


def reference_forward(x, w1, b1, w2, b2):
    h = jnp.maximum(x @ w1 + b1, 0.0)
    return h @ w2 + b2


if __name__ == "__main__":
    key = jax.random.PRNGKey(0)
    pkey, xkey = jax.random.split(key)
    params = init_params(pkey)
    w1, b1, w2, b2 = params

    # bf16 operands (f32 accumulation) -> compare against the f32 reference with
    # bf16-appropriate tolerances.
    TOL = dict(atol=3e-2, rtol=3e-2)

    # Batched observations (like the .loss() path): [batch=2, input_size=8]
    x = jax.random.normal(xkey, (2, INPUT_SIZE), jnp.float32)
    out = jax.block_until_ready(value_nn_forward(x, w1, b1, w2, b2))
    ref = reference_forward(x, w1, b1, w2, b2)
    assert out.shape == (2, OUTPUT_SIZE)
    assert jnp.allclose(out, ref, **TOL), (out, ref)

    # Ragged batch exercising padding + multiple grid steps (cap tile at 128 -> grid=3).
    xb = jax.random.normal(xkey, (300, INPUT_SIZE), jnp.float32)
    outb = jax.block_until_ready(value_nn_forward(xb, w1, b1, w2, b2, max_tb=128))
    refb = reference_forward(xb, w1, b1, w2, b2)
    assert outb.shape == (300, OUTPUT_SIZE)
    assert jnp.allclose(outb, refb, **TOL)

    # Larger batch at the default tile size (exercises the >=2-grid-step split for v7x).
    xc = jax.random.normal(xkey, (512, INPUT_SIZE), jnp.float32)
    outc = jax.block_until_ready(value_nn_forward(xc, w1, b1, w2, b2))
    refc = reference_forward(xc, w1, b1, w2, b2)
    assert outc.shape == (512, OUTPUT_SIZE)
    assert jnp.allclose(outc, refc, **TOL)

    # Single-state forward (mirrors ValueNN.forward returning a Python float).
    v = value_nn_forward_scalar(x[0], params)
    assert isinstance(v, float)

    print("KERNEL_OK")
</pallas_src>

<mosaic_0001>
module attributes {stable_mosaic.version = 11 : i64} {
  func.func @value_nn_kernel(%arg0: i32, %arg1: memref<9x128xbf16, #tpu.memory_space<vmem>>, %arg2: memref<256x9xbf16, #tpu.memory_space<vmem>>, %arg3: memref<1x256xbf16, #tpu.memory_space<vmem>>, %arg4: memref<1x1xf32, #tpu.memory_space<vmem>>, %arg5: memref<1x128xf32, #tpu.memory_space<vmem>>) attributes {dimension_semantics = [#tpu.dimension_semantics<parallel>], iteration_bounds = array<i64: 1>, scalar_prefetch = 0 : i64, scratch_operands = 0 : i64, tpu.core_type = #tpu.core_type<tc>, window_params = [{transform_indices = @transform_0, window_bounds = array<i64: 9, 128>}, {pipeline_mode = #tpu.pipeline_mode<synchronous>, transform_indices = @transform_1, window_bounds = array<i64: 256, 9>}, {pipeline_mode = #tpu.pipeline_mode<synchronous>, transform_indices = @transform_2, window_bounds = array<i64: 1, 256>}, {pipeline_mode = #tpu.pipeline_mode<synchronous>, transform_indices = @transform_3, window_bounds = array<i64: 1, 1>}, {transform_indices = @transform_4, window_bounds = array<i64: 1, 128>}]} {
    %c0 = arith.constant 0 : index
    %c0_0 = arith.constant 0 : index
    %0 = vector.load %arg2[%c0, %c0_0] : memref<256x9xbf16, #tpu.memory_space<vmem>>, vector<256x9xbf16>
    %c0_1 = arith.constant 0 : index
    %c0_2 = arith.constant 0 : index
    %1 = vector.load %arg1[%c0_1, %c0_2] : memref<9x128xbf16, #tpu.memory_space<vmem>>, vector<9x128xbf16>
    %cst = arith.constant dense<0.000000e+00> : vector<256x128xf32>
    %2 = tpu.matmul %0, %1, %cst {dimension_numbers = #tpu.dot_dimension_numbers<[1], [0], [0], [1], [0, 0, 1, 1], [], []>} : vector<256x9xbf16>, vector<9x128xbf16>, vector<256x128xf32> -> vector<256x128xf32>
    %cst_3 = arith.constant 0.000000e+00 : f32
    %3 = vector.broadcast %cst_3 : f32 to vector<256x128xf32>
    %4 = arith.maximumf %2, %3 : vector<256x128xf32>
    %5 = arith.truncf %4 : vector<256x128xf32> to vector<256x128xbf16>
    %c0_4 = arith.constant 0 : index
    %c0_5 = arith.constant 0 : index
    %6 = vector.load %arg3[%c0_4, %c0_5] : memref<1x256xbf16, #tpu.memory_space<vmem>>, vector<1x256xbf16>
    %cst_6 = arith.constant dense<0.000000e+00> : vector<1x128xf32>
    %7 = tpu.matmul %6, %5, %cst_6 {dimension_numbers = #tpu.dot_dimension_numbers<[1], [0], [0], [1], [0, 0, 1, 1], [], []>} : vector<1x256xbf16>, vector<256x128xbf16>, vector<1x128xf32> -> vector<1x128xf32>
    %c0_7 = arith.constant 0 : index
    %c0_8 = arith.constant 0 : index
    %8 = vector.load %arg4[%c0_7, %c0_8] : memref<1x1xf32, #tpu.memory_space<vmem>>, vector<1x1xf32>
    %9 = vector.broadcast %8 : vector<1x1xf32> to vector<1x128xf32>
    %10 = arith.addf %7, %9 : vector<1x128xf32>
    %c0_9 = arith.constant 0 : index
    %c0_10 = arith.constant 0 : index
    %11 = vector.load %arg5[%c0_9, %c0_10] : memref<1x128xf32, #tpu.memory_space<vmem>>, vector<1x128xf32>
    tpu.vector_store %arg5[%c0_9, %c0_10], %10 {strides = array<i32>} : memref<1x128xf32, #tpu.memory_space<vmem>>, vector<1x128xf32>,
    return
  }
  func.func @transform_0(%arg0: i32) -> (i32, i32) {
    %c0_i32 = arith.constant 0 : i32
    %c0_i32_0 = arith.constant 0 : i32
    return %c0_i32, %arg0 : i32, i32
  }
  func.func @transform_1(%arg0: i32) -> (i32, i32) {
    %c0_i32 = arith.constant 0 : i32
    %c0_i32_0 = arith.constant 0 : i32
    %c0_i32_1 = arith.constant 0 : i32
    return %c0_i32, %c0_i32_0 : i32, i32
  }
  func.func @transform_2(%arg0: i32) -> (i32, i32) {
    %c0_i32 = arith.constant 0 : i32
    %c0_i32_0 = arith.constant 0 : i32
    %c0_i32_1 = arith.constant 0 : i32
    return %c0_i32, %c0_i32_0 : i32, i32
  }
  func.func @transform_3(%arg0: i32) -> (i32, i32) {
    %c0_i32 = arith.constant 0 : i32
    %c0_i32_0 = arith.constant 0 : i32
    %c0_i32_1 = arith.constant 0 : i32
    return %c0_i32, %c0_i32_0 : i32, i32
  }
  func.func @transform_4(%arg0: i32) -> (i32, i32) {
    %c0_i32 = arith.constant 0 : i32
    %c0_i32_0 = arith.constant 0 : i32
    return %c0_i32, %arg0 : i32, i32
  }
}

</mosaic_0001>

<bundles_post_ra>
// kernel: value_nn_forward.1
= control target key start
LH: loop header
LB: loop body
LE: loop exit
PB: predicated region body
PF: predicated region fallthrough
CT: control target
= control target key end

     0   :  { %vm188_vm0 = vcmask 1043456   ;;  %vm189_vm1 = vcmask 1044480   ;;  %v483_v2 = vmov 65535   ;;  %vm139_vm2 = vcmask 72704   ;;  %s613_s0 = inlined_call_operand.vmem [shape: bf16[9,128], index: 0, kind: input, shape index: {}]   ;;  %s614_s1 = inlined_call_operand.vmem [shape: bf16[256,9], index: 1, kind: input, shape index: {}]   ;;  %s615_s2 = inlined_call_operand.vmem [shape: bf16[1,256], index: 2, kind: input, shape index: {}]   ;;  %s616_s3 = inlined_call_operand.<no memory space> [shape: f32[1,1], index: 3, kind: input, shape index: {}]   ;;  %s617_s4 = inlined_call_operand.vmem [shape: f32[1,128], index: 4, kind: output, shape index: {}]  }
   0x1   :  { %v443_v0 = vld [vmem:[%s613_s0] sm:$0xf]  ;;  %v477_v1 = vld [vmem:[%s613_s0] sm:$0x10]  ;;  %v190_v3 = vsel %vm188_vm0, 4294967295, %v483_v2  ;;  %v472_v8 = vld [vmem:[%s614_s1 + $0x58] sm:$0xff] }
   0x2   :  { %v444_v4 = vor.u32 %v477_v1, %v443_v0  ;;  %v191_v5 = vsel %vm189_vm1, %v190_v3, 0  ;;  %v461_v7 = vld [vmem:[%s614_s1] sm:$0xff]  ;;  %v467_v9 = vld [vmem:[%s614_s1 + $0x30] sm:$0xff]  ;;  %v462_v10 = vld [vmem:[%s614_s1 + $0x8] sm:$0xff] }
   0x3   :  { %v473_v11 = vld [vmem:[%s614_s1 + $0x60] sm:$0xff]  ;;  %v468_v12 = vld [vmem:[%s614_s1 + $0x38] sm:$0xff]  ;;  %v463_v13 = vld [vmem:[%s614_s1 + $0x10] sm:$0xff] }
   0x4   :  { %v193_v6 = vand.u32 %v444_v4, %v191_v5  ;;  %v474_v14 = vld [vmem:[%s614_s1 + $0x68] sm:$0xff]  ;;  %v469_v15 = vld [vmem:[%s614_s1 + $0x40] sm:$0xff]  ;;  %v464_v16 = vld [vmem:[%s614_s1 + $0x18] sm:$0xff] }
   0x5   :  { %v475_v17 = vld [vmem:[%s614_s1 + $0x70] sm:$0xff]  ;;  %v470_v18 = vld [vmem:[%s614_s1 + $0x48] sm:$0xff]  ;;  %v465_v19 = vld [vmem:[%s614_s1 + $0x20] sm:$0xff] }
   0x6   :  { %202 = vmatpush.bf16.msra.mxu0 %v193_v6  ;;  %479 = vmatpush.bf16.msra.mxu3 %v193_v6  ;;  %v476_v20 = vld [vmem:[%s614_s1 + $0x78] sm:$0xff]  ;;  %v471_v21 = vld [vmem:[%s614_s1 + $0x50] sm:$0xff]  ;;  %v466_v22 = vld [vmem:[%s614_s1 + $0x28] sm:$0xff] }
   0x7   :  { %478 = vmatpush.bf16.msra.mxu1 %v193_v6  ;;  %v332_v1 = vld [vmem:[%s615_s2] sm:$0x3] }
   0x8   :  { %341 = vst [vmem:[#allocation1] ss:$9 sm:$0xff] %v332_v1 }
   0x9   :  { %445 = vmatmul.msk.bf16.vlgmr.msra.gmra.mxu0 %vm139_vm2, %v461_v7  ;;  %456 = vmatmul.msk.bf16.vlgmr.msra.gmra.mxu3 %vm139_vm2, %v472_v8 }
   0xa   :  { %451 = vmatmul.msk.bf16.vlgmr.msra.gmra.mxu1 %vm139_vm2, %v467_v9 }
  0x19   :  { %446 = vmatmul.msk.bf16.gmra.mxu0 %vm139_vm2, %v462_v10  ;;  %457 = vmatmul.msk.bf16.gmra.mxu3 %vm139_vm2, %v473_v11  ;;  %v9_v10 = vstv %s616_s3 }
  0x1a   :  { %452 = vmatmul.msk.bf16.gmra.mxu1 %vm139_vm2, %v468_v12  ;;  %10 = vst [vmem:[#allocation2] sm:$0x1] %v9_v10 }
  0x29   :  { %447 = vmatmul.msk.bf16.gmra.mxu0 %vm139_vm2, %v463_v13  ;;  %458 = vmatmul.msk.bf16.gmra.mxu3 %vm139_vm2, %v474_v14  ;;  %v484_v13 = vmov 0  }
  0x2a   :  { %453 = vmatmul.msk.bf16.gmra.mxu1 %vm139_vm2, %v469_v15  ;;  %482 = vset.pattern.permute.xlu0 %v484_v13 }
  0x39   :  { %448 = vmatmul.msk.bf16.gmra.mxu0 %vm139_vm2, %v464_v16  ;;  %459 = vmatmul.msk.bf16.gmra.mxu3 %vm139_vm2, %v475_v17 }
  0x3a   :  { %454 = vmatmul.msk.bf16.gmra.mxu1 %vm139_vm2, %v470_v18 }
  0x49   :  { %449 = vmatmul.msk.bf16.gmra.mxu0 %vm139_vm2, %v465_v19  ;;  %460 = vmatmul.msk.bf16.gmra.mxu3 %vm139_vm2, %v476_v20 }
  0x4a   :  { %455 = vmatmul.msk.bf16.gmra.mxu1 %vm139_vm2, %v471_v21 }
  0x59   :  { %450 = vmatmul.msk.bf16.gmra.mxu0 %vm139_vm2, %v466_v22 }
  0x86   :  { %v204_v23 = vpop.f32.mrf.mxu0 }
  0x87   :  { %v234_v24 = vpop.f32.mrf.mxu1  ;;  %v284_v27 = vmax.f32 %v204_v23, 0.0  ;;  %v333_v23 = vld [vmem:[#allocation2] sm:$0x1] }
  0x88   :  { %v296_v45 = vmax.f32 %v234_v24, 0.0  ;;  %336 = vperm.xlu0 %482, %v333_v23  }
  0x8c   :  { %v259_v25 = vpop.f32.mrf.mxu3 }
  0x8d   :  { %v306_v32 = vmax.f32 %v259_v25, 0.0 }
  0x8e   :  { %v206_v26 = vpop.f32.mrf.mxu0 }
  0x8f   :  { %v285_v28 = vmax.f32 %v206_v26, 0.0  ;;  %v236_v29 = vpop.f32.mrf.mxu1 }
  0x90   :  { %v297_v46 = vmax.f32 %v236_v29, 0.0 }
  0x91   :  { %v580_v30 = vpack.c.bf16 %v285_v28, %v284_v27 }
  0x92   :  { %v322_v50 = vpack.c.bf16 %v297_v46, %v296_v45  ;;  %v342_v46 = vld [vmem:[#allocation1] sm:$0xff] }
  0x94   :  { %v261_v31 = vpop.f32.mrf.mxu3 }
  0x95   :  { %v307_v33 = vmax.f32 %v261_v31, 0.0 }
  0x96   :  { %v209_v34 = vpop.f32.mrf.mxu0 }
  0x97   :  { %v239_v35 = vpop.f32.mrf.mxu1  ;;  %v582_v36 = vpack.c.bf16 %v307_v33, %v306_v32  ;;  %v286_v40 = vmax.f32 %v209_v34, 0.0 }
  0x98   :  { %v298_v39 = vmax.f32 %v239_v35, 0.0 }
  0x9c   :  { %v584_v37 = vpop.f32.mrf.mxu3 }
  0x9d   :  { %v308_v20 = vmax.f32 %v584_v37, 0.0 }
  0x9e   :  { %v211_v38 = vpop.f32.mrf.mxu0 }
  0x9f   :  { %v287_v41 = vmax.f32 %v211_v38, 0.0  ;;  %v241_v42 = vpop.f32.mrf.mxu1 }
  0xa0   :  { %v299_v43 = vmax.f32 %v241_v42, 0.0 }
  0xa1   :  { %v586_v44 = vpack.c.bf16 %v287_v41, %v286_v40 }
  0xa2   :  { %v323_v47 = vpack.c.bf16 %v299_v43, %v298_v39 }
  0xa4   :  { %v266_v48 = vpop.f32.mrf.mxu3  ;;  %346 = vmatpush.bf16.msrb.mxu1 %v323_v47 }
  0xa5   :  { %v309_v16 = vmax.f32 %v266_v48, 0.0 }
  0xa6   :  { %v588_v49 = vpop.f32.mrf.mxu0 }
  0xa7   :  { %v592_v53 = vpop.f32.mrf.mxu1  ;;  %v328_v25 = vpack.c.bf16 %v309_v16, %v308_v20  ;;  %v288_v35 = vmax.f32 %v588_v49, 0.0 }
  0xa8   :  { %347 = vmatpush.bf16.msrb.mxu1 %v322_v50  ;;  %v300_v41 = vmax.f32 %v592_v53, 0.0 }
  0xac   :  { %v269_v51 = vpop.f32.mrf.mxu3 }
  0xad   :  { %v310_v14 = vmax.f32 %v269_v51, 0.0 }
  0xae   :  { %v590_v52 = vpop.f32.mrf.mxu0 }
  0xaf   :  { %v594_v57 = vpop.f32.mrf.mxu1  ;;  %v289_v33 = vmax.f32 %v590_v52, 0.0 }
  0xb0   :  { %v301_v42 = vmax.f32 %v594_v57, 0.0 }
  0xb1   :  { %v318_v40 = vpack.c.bf16 %v289_v33, %v288_v35 }
  0xb2   :  { %v324_v45 = vpack.c.bf16 %v301_v42, %v300_v41 }
  0xb4   :  { %v271_v54 = vpop.f32.mrf.mxu3 }
  0xb5   :  { %v311_v11 = vmax.f32 %v271_v54, 0.0 }
  0xb6   :  { %v219_v55 = vpop.f32.mrf.mxu0 }
  0xb7   :  { %v249_v61 = vpop.f32.mrf.mxu1  ;;  %v329_v19 = vpack.c.bf16 %v311_v11, %v310_v14  ;;  %v290_v29 = vmax.f32 %v219_v55, 0.0 }
  0xb8   :  { %v302_v37 = vmax.f32 %v249_v61, 0.0 }
  0xbc   :  { %v274_v56 = vpop.f32.mrf.mxu3 }
  0xbd   :  { %v312_v8 = vmax.f32 %v274_v56, 0.0 }
  0xbe   :  { %v221_v58 = vpop.f32.mrf.mxu0 }
  0xbf   :  { %v251_v0 = vpop.f32.mrf.mxu1  ;;  %v291_v27 = vmax.f32 %v221_v58, 0.0 }
  0xc0   :  { %v303_v38 = vmax.f32 %v251_v0, 0.0 }
  0xc1   :  { %v319_v34 = vpack.c.bf16 %v291_v27, %v290_v29 }
  0xc2   :  { %v325_v43 = vpack.c.bf16 %v303_v38, %v302_v37 }
  0xc4   :  { %v276_v59 = vpop.f32.mrf.mxu3 }
  0xc5   :  { %v313_v6 = vmax.f32 %v276_v59, 0.0 }
  0xc6   :  { %v224_v60 = vpop.f32.mrf.mxu0 }
  0xc7   :  { %v254_v9 = vpop.f32.mrf.mxu1  ;;  %v330_v12 = vpack.c.bf16 %v313_v6, %v312_v8  ;;  %v292_v24 = vmax.f32 %v224_v60, 0.0 }
  0xc8   :  { %v304_v31 = vmax.f32 %v254_v9, 0.0 }
  0xcc   :  { %v279_v62 = vpop.f32.mrf.mxu3 }
  0xcd   :  { %v314_v3 = vmax.f32 %v279_v62, 0.0 }
  0xce   :  { %v226_v63 = vpop.f32.mrf.mxu0 }
  0xcf   :  { %v293_v21 = vmax.f32 %v226_v63, 0.0  ;;  %v256_v26 = vpop.f32.mrf.mxu1 }
  0xd0   :  { %v305_v32 = vmax.f32 %v256_v26, 0.0 }
  0xd1   :  { %v320_v28 = vpack.c.bf16 %v293_v21, %v292_v24 }
  0xd2   :  { %v326_v39 = vpack.c.bf16 %v305_v32, %v304_v31 }
  0xd4   :  { %v281_v2 = vpop.f32.mrf.mxu3 }
  0xd5   :  { %v315_v4 = vmax.f32 %v281_v2, 0.0 }
  0xd6   :  { %v229_v5 = vpop.f32.mrf.mxu0 }
  0xd7   :  { %v331_v7 = vpack.c.bf16 %v315_v4, %v314_v3  ;;  %v294_v17 = vmax.f32 %v229_v5, 0.0 }
  0xd9   :  { %359 = vmatpush.bf16.msra.mxu2 %v331_v7 }
  0xdd   :  { %360 = vmatpush.bf16.msra.mxu2 %v330_v12 }
  0xde   :  { %v231_v15 = vpop.f32.mrf.mxu0 }
  0xdf   :  { %v295_v18 = vmax.f32 %v231_v15, 0.0 }
  0xe1   :  { %361 = vmatpush.bf16.msra.mxu2 %v329_v19  ;;  %v321_v22 = vpack.c.bf16 %v295_v18, %v294_v17 }
  0xe3   :  { %348 = vmatpush.bf16.msrb.mxu1 %v321_v22 }
  0xe5   :  { %362 = vmatpush.bf16.msra.mxu2 %v328_v25 }
  0xe7   :  { %349 = vmatpush.bf16.msrb.mxu1 %v320_v28 }
  0xe9   :  { %363 = vmatpush.bf16.msra.mxu2 %v582_v36  ;;  %v343_v36 = vld [vmem:[#allocation1 + $0x9] sm:$0xff] }
  0xeb   :  { %350 = vmatpush.bf16.msrb.mxu1 %v319_v34 }
  0xed   :  { %364 = vmatpush.bf16.msra.mxu2 %v326_v39 }
  0xef   :  { %351 = vmatpush.bf16.msrb.mxu1 %v318_v40 }
  0xf1   :  { %365 = vmatpush.bf16.msra.mxu2 %v325_v43 }
  0xf3   :  { %352 = vmatpush.bf16.msrb.mxu1 %v586_v44 }
  0xf5   :  { %366 = vmatpush.bf16.msra.mxu2 %v324_v45 }
  0xf7   :  { %353 = vmatpush.bf16.msrb.mxu1 %v580_v30 }
  0xf8   :  { %367 = vmatmul.bf16.vlgmr.msra.gmra.mxu2 %v343_v36 }
  0xfa   :  { %354 = vmatmul.bf16.vlgmr.msrb.gmra.mxu1 %v342_v46  ;;  %v337_v47 = vpop.permute.xlu0 %336 }
  0xfb   :  { %v339_v48 = vperm.slane %v337_v47, 0 }
 0x177   :  { %v355_v49 = vpop.f32.mrf.mxu1 }
 0x178   :  { %v356_v50 = vadd.f32 %v355_v49, %v339_v48 }
 0x17b   :  { %v368_v51 = vpop.f32.mrf.mxu2 }
 0x17c   :  { %v369_v52 = vadd.f32 %v368_v51, %v356_v50 }
 0x17e   :  { %372 = vst [vmem:[%s617_s4] sm:$0x1] %v369_v52 }
 0x17f   :  { %v357_v53 = vpop.f32.mrf.mxu1 }
 0x183   :  { %v370_v44 = vpop.f32.mrf.mxu2 }

</bundles_post_ra>
